<compile_context>
chip_gen: v7x
topology: tpu7x:2x2x1
jax: 0.10.0
libtpu: 0.0.40
codegen_flags: <defaults>
</compile_context>

<pallas_src>
import functools

import jax
import jax.numpy as jnp
from jax.experimental import pallas as pl
from jax.experimental.pallas import tpu as pltpu

ALPHA = 0.6            # FractionalTanh default
_W = 512               # lane-dense last dim (multiple of 128)
_TARGET_STEPS = 8      # aim for at least this many grid steps on mid-size inputs

_HW_CACHE = None


def _hw_params():
    """(max_row_tile, vmem_limit_bytes) derived from the chip's VMEM capacity."""
    global _HW_CACHE
    if _HW_CACHE is None:
        try:
            vmem_cap = int(pltpu.get_tpu_info().vmem_capacity_bytes)
        except Exception:
            vmem_cap = 64 << 20  # conservative fallback (v7x-sized)
        if vmem_cap >= (128 << 20):
            # v5e / v6e: 8 MiB blocks -> 32 MiB resident (2x in + 2x out), needs
            # the scoped limit raised above the 16/32 MiB defaults.
            _HW_CACHE = (4096, 64 << 20)
        else:
            # v7x (64 MiB physical): 4 MiB blocks -> 16 MiB resident fits the
            # 32 MiB scoped limit with headroom.
            _HW_CACHE = (2048, 32 << 20)
    return _HW_CACHE


def _row_tile_for(rows, max_row_tile):
    """Pick a row tile: multiple of 8, >= ~_TARGET_STEPS grid steps, capped per chip."""
    if rows <= 8:
        return rows                       # tiny input: block == full array dims
    tile = 8 * pl.cdiv(rows, 8 * _TARGET_STEPS)
    return max(8, min(tile, max_row_tile))


def _frac_tanh_kernel(x_ref, o_ref, *, alpha, two_alpha):
    t = x_ref[...].astype(jnp.float32)
    s = 2.0 * t
    s_pos = jnp.maximum(s, 1e-7)          # clamp applied to s = 2*t (matches torch)
    # pow(s_pos, 1-alpha) * exp(-s) folded into a single exp of a sum:
    term = jnp.exp(-s) + jnp.exp((1.0 - alpha) * jnp.log(s_pos) - s)
    o_ref[...] = (3.0 - two_alpha * term).astype(o_ref.dtype)


def _frac_tanh_slab(slab, alpha, out_dtype):
    """Run the Pallas kernel on a (rows, _W) slab."""
    rows, w = slab.shape
    max_row_tile, vmem_limit = _hw_params()
    row_tile = _row_tile_for(rows, max_row_tile)
    grid = (pl.cdiv(rows, row_tile),)

    n_elems = rows * w
    cost = pl.CostEstimate(
        flops=8 * n_elems,
        transcendentals=3 * n_elems,       # exp, exp, log per element
        bytes_accessed=2 * n_elems * jnp.dtype(out_dtype).itemsize,
    )

    return pl.pallas_call(
        functools.partial(_frac_tanh_kernel, alpha=alpha, two_alpha=2.0 * alpha),
        out_shape=jax.ShapeDtypeStruct((rows, w), out_dtype),
        grid_spec=pltpu.PrefetchScalarGridSpec(
            num_scalar_prefetch=0,
            grid=grid,
            in_specs=[pl.BlockSpec((row_tile, w), lambda i: (i, 0))],
            out_specs=pl.BlockSpec((row_tile, w), lambda i: (i, 0)),
        ),
        compiler_params=pltpu.CompilerParams(
            dimension_semantics=("parallel",),
            vmem_limit_bytes=vmem_limit,
        ),
        cost_estimate=cost,
    )(slab)


def _frac_tanh_jnp(t, alpha):
    """Plain-jnp fallback for tiny tails (< _W elements)."""
    s = 2.0 * t.astype(jnp.float32)
    s_pos = jnp.maximum(s, 1e-7)
    term = jnp.exp(-s) + jnp.exp((1.0 - alpha) * jnp.log(s_pos) - s)
    return (3.0 - 2.0 * alpha * term).astype(t.dtype)


def fractional_tanh(x, alpha=ALPHA):
    """Elementwise FractionalTanh via Pallas. Works on any shape / float dtype."""
    orig_shape = x.shape
    flat = x.reshape(-1)
    n = flat.shape[0]
    n_main = (n // _W) * _W

    if n_main == 0:
        # Whole input smaller than one lane row: not worth a kernel launch.
        return _frac_tanh_jnp(flat, alpha).reshape(orig_shape)

    if n_main == n:
        # Fully 512-aligned: no pad, no slice, no extra HBM passes.
        slab = flat.reshape(n // _W, _W)
        return _frac_tanh_slab(slab, alpha, x.dtype).reshape(orig_shape)

    # Ragged: kernel on the aligned prefix, tiny (< 512 elem) tail in jnp.
    main = _frac_tanh_slab(flat[:n_main].reshape(n_main // _W, _W), alpha, x.dtype)
    tail = _frac_tanh_jnp(flat[n_main:], alpha)
    return jnp.concatenate([main.reshape(-1), tail]).reshape(orig_shape)


def _reference(x, alpha=ALPHA):
    """Pure-JAX reference mirroring the PyTorch module literally."""
    t = x.astype(jnp.float32)
    s = 2.0 * t
    s_pos = jnp.maximum(s, 1e-7)
    exp_neg_s = jnp.exp(-s)
    frac_sig = 1.0 + (1.0
                      - alpha * exp_neg_s
                      - alpha * jnp.power(s_pos, 1.0 - alpha) * exp_neg_s)
    return (2.0 * frac_sig - 1.0).astype(x.dtype)


if __name__ == "__main__":
    key = jax.random.PRNGKey(0)
    # NCHW input, small shape (512-aligned element count -> pure kernel path).
    x = jax.random.normal(key, (2, 4, 16, 16), dtype=jnp.float32)

    y = jax.block_until_ready(fractional_tanh(x))
    y_ref = _reference(x)
    assert y.shape == x.shape and y.dtype == x.dtype
    assert jnp.allclose(y, y_ref, atol=1e-5, rtol=1e-5), "mismatch vs reference"

    # Ragged (non-512-aligned) size: kernel prefix + jnp tail path.
    x2 = jax.random.normal(jax.random.PRNGKey(1), (3, 5, 7, 11), dtype=jnp.float32)
    y2 = jax.block_until_ready(fractional_tanh(x2))
    assert jnp.allclose(y2, _reference(x2), atol=1e-5, rtol=1e-5), "mismatch (ragged)"

    # Mid-size input: exercises the multi-step (pipelined) grid path.
    x3 = jax.random.normal(jax.random.PRNGKey(2), (8, 16, 32, 32), dtype=jnp.float32)
    y3 = jax.block_until_ready(fractional_tanh(x3))
    assert jnp.allclose(y3, _reference(x3), atol=1e-5, rtol=1e-5), "mismatch (mid-size)"

    print("KERNEL_OK")
</pallas_src>

<mosaic_0001>
module attributes {stable_mosaic.version = 11 : i64} {
  func.func @_frac_tanh_kernel(%arg0: i32, %arg1: memref<4x512xf32, #tpu.memory_space<vmem>>, %arg2: memref<4x512xf32, #tpu.memory_space<vmem>>) attributes {dimension_semantics = [#tpu.dimension_semantics<parallel>], iteration_bounds = array<i64: 1>, scalar_prefetch = 0 : i64, scratch_operands = 0 : i64, tpu.core_type = #tpu.core_type<tc>, window_params = [{transform_indices = @transform_0, window_bounds = array<i64: 4, 512>}, {transform_indices = @transform_1, window_bounds = array<i64: 4, 512>}]} {
    %c0 = arith.constant 0 : index
    %c0_0 = arith.constant 0 : index
    %0 = vector.load %arg1[%c0, %c0_0] : memref<4x512xf32, #tpu.memory_space<vmem>>, vector<4x512xf32>
    %cst = arith.constant 2.000000e+00 : f32
    %1 = vector.broadcast %cst : f32 to vector<4x512xf32>
    %2 = arith.mulf %1, %0 : vector<4x512xf32>
    %cst_1 = arith.constant 1.000000e-07 : f32
    %3 = vector.broadcast %cst_1 : f32 to vector<4x512xf32>
    %4 = arith.maximumf %2, %3 : vector<4x512xf32>
    %cst_2 = arith.constant 0.000000e+00 : f32
    %5 = vector.broadcast %cst_2 : f32 to vector<4x512xf32>
    %6 = arith.subf %5, %2 : vector<4x512xf32>
    %7 = math.exp %6 : vector<4x512xf32>
    %8 = math.log %4 : vector<4x512xf32>
    %cst_3 = arith.constant 4.000000e-01 : f32
    %9 = vector.broadcast %cst_3 : f32 to vector<4x512xf32>
    %10 = arith.mulf %9, %8 : vector<4x512xf32>
    %11 = arith.subf %10, %2 : vector<4x512xf32>
    %12 = math.exp %11 : vector<4x512xf32>
    %13 = arith.addf %7, %12 : vector<4x512xf32>
    %cst_4 = arith.constant 1.200000e+00 : f32
    %14 = vector.broadcast %cst_4 : f32 to vector<4x512xf32>
    %15 = arith.mulf %14, %13 : vector<4x512xf32>
    %cst_5 = arith.constant 3.000000e+00 : f32
    %16 = vector.broadcast %cst_5 : f32 to vector<4x512xf32>
    %17 = arith.subf %16, %15 : vector<4x512xf32>
    %c0_6 = arith.constant 0 : index
    %c0_7 = arith.constant 0 : index
    %18 = vector.load %arg2[%c0_6, %c0_7] : memref<4x512xf32, #tpu.memory_space<vmem>>, vector<4x512xf32>
    tpu.vector_store %arg2[%c0_6, %c0_7], %17 {strides = array<i32>} : memref<4x512xf32, #tpu.memory_space<vmem>>, vector<4x512xf32>,
    return
  }
  func.func @transform_0(%arg0: i32) -> (i32, i32) {
    %c0_i32 = arith.constant 0 : i32
    %c0_i32_0 = arith.constant 0 : i32
    return %arg0, %c0_i32 : i32, i32
  }
  func.func @transform_1(%arg0: i32) -> (i32, i32) {
    %c0_i32 = arith.constant 0 : i32
    %c0_i32_0 = arith.constant 0 : i32
    return %arg0, %c0_i32 : i32, i32
  }
}

</mosaic_0001>

<bundles_post_ra>
// kernel: tpu_custom_call.1
= control target key start
LH: loop header
LB: loop body
LE: loop exit
PB: predicated region body
PF: predicated region fallthrough
CT: control target
= control target key end

     0   :  { %6 = vsyncpa [#allocation3], 0  ;;  %s166_s0 = inlined_call_operand.hbm [shape: f32[4,512], index: 0, kind: input, shape index: {}]   ;;  %s167_s1 = inlined_call_operand.hbm [shape: f32[4,512], index: 1, kind: output, shape index: {}]  }
   0x1   :  { %7 = vsyncpa [#allocation4], 0  ;;  %s130_s6 = smov [#allocation2]   ;;  %s82_s10 = scalar_lea.hbm %s166_s0, 256 }
   0x2   :  { %s14_s7 = sshll.u32 %s130_s6, 4  ;;  %p83_p0 = scmp.ne.s32.totalorder %s166_s0, %s82_s10  ;;  %s15_s7 = int_to_ptr.vmem [resolvable:$true] %s14_s7 }
   0x3   :  { %p86_p1 = scmp.lt.u32.totalorder %s82_s10, %s166_s0 }
   0x5   :  { %p88_p2 = pnand %p86_p1, %p83_p0 }
   0x7   :  { %91 = shalt.err (!%p88_p2)
}
   0x8   :  { %s92_s15 = scalar_lea.vmem %s15_s7, 256  ;;  %p97_p4 = scmp.lt.s32.totalorder %s15_s7, %s15_s7 }
   0x9   :  { %p93_p3 = scmp.ne.s32.totalorder %s15_s7, %s92_s15  ;;  %p98_p5 = scmp.lt.s32.totalorder %s92_s15, %s92_s15 }
   0xb   :  { %p99_p6 = por %p98_p5, %p97_p4 }
   0xd   :  { %p100_p7 = pnand %p99_p6, %p93_p3 }
   0xf   :  { %103 = shalt.err (!%p100_p7)
}
  0x10   :  { %17 = dma.hbm_to_vmem [thread:$0]  %s166_s0, 256, %s15_s7, [#allocation3]  }
  0x11   :  { %126 = dma.done.wait [#allocation3], 256  }
  0x12   :  { %127 = vsyncadd [#allocation3], 4294967040  ;;  %v21_v0 = vld [vmem:[#allocation2] sm:$0xff]  ;;  %v22_v1 = vld [vmem:[#allocation2 + $0x8] sm:$0xff]  ;;  %s131_s0 = smov [#allocation5]  }
  0x13   :  { %v23_v2 = vmul.f32 2.0, %v21_v0  ;;  %v24_v3 = vmul.f32 2.0, %v22_v1  ;;  %s59_s18 = sshll.u32 %s131_s0, 4  ;;  %s60_s18 = int_to_ptr.vmem [resolvable:$true] %s59_s18 }
  0x14   :  { %s104_s19 = scalar_lea.vmem %s60_s18, 256  ;;  %p109_p9 = scmp.lt.s32.totalorder %s60_s18, %s60_s18 }
  0x15   :  { %v25_v4 = vmax.f32 %v23_v2, 1e-07  ;;  %v26_v5 = vmax.f32 %v24_v3, 1e-07  ;;  %v27_v6 = vsub.f32 0.0, %v23_v2  ;;  %v28_v8 = vsub.f32 0.0, %v24_v3  ;;  %p105_p8 = scmp.ne.s32.totalorder %s60_s18, %s104_s19  ;;  %p110_p10 = scmp.lt.s32.totalorder %s104_s19, %s104_s19 }
  0x17   :  { %70 = vlog2.f32 %v25_v4  ;;  %v29_v12 = vmul.f32 1.442695, %v27_v6  ;;  %v31_v14 = vmul.f32 1.442695, %v28_v8  ;;  %p111_p11 = por %p110_p10, %p109_p9 }
  0x18   :  { %72 = vlog2.f32 %v26_v5 }
  0x19   :  { %74 = vpow2.f32 %v29_v12  ;;  %p112_p12 = pnand %p111_p11, %p105_p8 }
  0x1a   :  { %76 = vpow2.f32 %v31_v14 }
  0x21   :  { %v71_v7 = vpop.eup %70 }
  0x22   :  { %v73_v9 = vpop.eup %72  ;;  %v34_v10 = vmul.f32 0.6931472, %v71_v7 }
  0x23   :  { %v36_v11 = vmul.f32 0.6931472, %v73_v9  ;;  %v75_v20 = vpop.eup %74 }
  0x24   :  { %v37_v13 = vmul.f32 0.4, %v34_v10  ;;  %v77_v21 = vpop.eup %76 }
  0x25   :  { %v38_v15 = vmul.f32 0.4, %v36_v11 }
  0x26   :  { %v39_v16 = vsub.f32 %v37_v13, %v23_v2 }
  0x27   :  { %v40_v17 = vsub.f32 %v38_v15, %v24_v3 }
  0x28   :  { %v41_v18 = vmul.f32 1.442695, %v39_v16 }
  0x29   :  { %v43_v19 = vmul.f32 1.442695, %v40_v17 }
  0x2a   :  { %78 = vpow2.f32 %v41_v18 }
  0x2b   :  { %80 = vpow2.f32 %v43_v19 }
  0x34   :  { %v79_v22 = vpop.eup %78 }
  0x35   :  { %v81_v23 = vpop.eup %80  ;;  %v45_v24 = vadd.f32 %v79_v22, %v75_v20 }
  0x36   :  { %v46_v25 = vadd.f32 %v81_v23, %v77_v21 }
  0x37   :  { %v47_v26 = vmul.f32 1.2, %v45_v24 }
  0x38   :  { %v48_v27 = vmul.f32 1.2, %v46_v25 }
  0x39   :  { %v49_v28 = vsub.f32 3.0, %v47_v26 }
  0x3a   :  { %v50_v29 = vsub.f32 3.0, %v48_v27 }
  0x3b   :  { %51 = vst [vmem:[#allocation5] sm:$0xff] %v49_v28 }
  0x3c   :  { %52 = vst [vmem:[#allocation5 + $0x8] sm:$0xff] %v50_v29 }
  0x3d   :  { %115 = shalt.err (!%p112_p12)
}
  0x3e   :  { %s116_s22 = scalar_lea.hbm %s167_s1, 256 }
  0x3f   :  { %p117_p13 = scmp.ne.s32.totalorder %s167_s1, %s116_s22  ;;  %p120_p0 = scmp.lt.u32.totalorder %s116_s22, %s167_s1 }
  0x41   :  { %p122_p1 = pnand %p120_p0, %p117_p13 }
  0x43   :  { %125 = shalt.err (!%p122_p1)
}
  0x44   :  { %62 = dma.vmem_to_hbm [thread:$0]  %s60_s18, 256, %s167_s1, [#allocation4]  }
  0x45   :  { %128 = dma.done.wait [#allocation4], 256  }
  0x46   :  { %129 = vsyncadd [#allocation4], 4294967040 }
  0x47   :  { %66 = vsyncpa [#allocation3], 1 }
  0x48   :  { %67 = vsyncpa [#allocation4], 1 }

</bundles_post_ra>
